<compile_context>
chip_gen: v7x
topology: tpu7x:2x2x1
jax: 0.10.0
libtpu: 0.0.40
codegen_flags: <defaults>
</compile_context>

<pallas_src>
import functools

import jax
import jax.numpy as jnp
from jax.experimental import pallas as pl
from jax.experimental.pallas import tpu as pltpu

HIDDEN1 = 128
HIDDEN2 = 256
MAX_TILE_B = 512  # keeps >=2 grid steps for training-sized batches (v7x 2-TC sharding)


def _round_up(n: int, m: int) -> int:
    return ((n + m - 1) // m) * m


def dqn_kernel(x_ref, w1_ref, b1_ref, w2_ref, b2_ref, w3_ref, b3_ref, o_ref):
    # Fused 3-layer MLP for one batch tile.
    # x arrives as f32 and is cast to bf16 in-register (MXU-native operands);
    # accumulation, bias adds and ReLU stay f32.
    x = x_ref[...].astype(jnp.bfloat16)
    h1 = jnp.dot(x, w1_ref[...], preferred_element_type=jnp.float32) + b1_ref[...]
    h1 = jnp.maximum(h1, 0.0).astype(jnp.bfloat16)
    h2 = jnp.dot(h1, w2_ref[...], preferred_element_type=jnp.float32) + b2_ref[...]
    h2 = jnp.maximum(h2, 0.0).astype(jnp.bfloat16)
    o_ref[...] = (
        jnp.dot(h2, w3_ref[...], preferred_element_type=jnp.float32) + b3_ref[...]
    )


def init_params(key, input_dim, output_dim):
    """PyTorch-default-like Linear init (U[-1/sqrt(fan_in), +]); f32 master copy."""
    def linear(k, fan_in, fan_out):
        kw, kb = jax.random.split(k)
        bound = 1.0 / jnp.sqrt(jnp.float32(fan_in))
        w = jax.random.uniform(kw, (fan_in, fan_out), jnp.float32, -bound, bound)
        b = jax.random.uniform(kb, (1, fan_out), jnp.float32, -bound, bound)
        return w, b

    k1, k2, k3 = jax.random.split(key, 3)
    w1, b1 = linear(k1, input_dim, HIDDEN1)
    w2, b2 = linear(k2, HIDDEN1, HIDDEN2)
    w3, b3 = linear(k3, HIDDEN2, output_dim)
    return {"w1": w1, "b1": b1, "w2": w2, "b2": b2, "w3": w3, "b3": b3}


def prepare_params(params):
    """One-time dtype conversion: bf16 matmul operands, f32 biases. No padding."""
    return {
        "w1": params["w1"].astype(jnp.bfloat16),
        "b1": params["b1"].astype(jnp.float32),
        "w2": params["w2"].astype(jnp.bfloat16),
        "b2": params["b2"].astype(jnp.float32),
        "w3": params["w3"].astype(jnp.bfloat16),
        "b3": params["b3"].astype(jnp.float32),
    }


def _choose_tiling(B: int):
    """Batch tiling: >=2 tiles once B >= 64, tile rows aligned to 8/16, minimal pad."""
    B8 = _round_up(B, 8)
    if B8 < 64:
        tile_b = B8
    else:
        n_tiles = max(2, pl.cdiv(B8, MAX_TILE_B))
        tile_b = _round_up(pl.cdiv(B8, n_tiles), 16)
    b_pad = _round_up(B, tile_b)
    return tile_b, b_pad


def _dqn_forward(x, prep):
    """x: [B, input_dim] f32; prep: output of prepare_params. Returns [B, output_dim] f32."""
    B, d_in = x.shape
    d_out = prep["w3"].shape[1]

    tile_b, b_pad = _choose_tiling(B)
    grid = (b_pad // tile_b,)

    # Only (cheap, fused-under-jit) zero-padding of the batch when needed.
    x_p = x if b_pad == B else jnp.pad(x, ((0, b_pad - B), (0, 0)))

    flops = 2 * b_pad * (d_in * HIDDEN1 + HIDDEN1 * HIDDEN2 + HIDDEN2 * d_out)
    bytes_accessed = (
        x_p.size * 4
        + prep["w1"].size * 2 + prep["w2"].size * 2 + prep["w3"].size * 2
        + prep["b1"].size * 4 + prep["b2"].size * 4 + prep["b3"].size * 4
        + b_pad * d_out * 4
    )

    out = pl.pallas_call(
        dqn_kernel,
        out_shape=jax.ShapeDtypeStruct((b_pad, d_out), jnp.float32),
        grid=grid,
        in_specs=[
            pl.BlockSpec((tile_b, d_in), lambda i: (i, 0)),     # x tile (f32, cast in-kernel)
            pl.BlockSpec((d_in, HIDDEN1), lambda i: (0, 0)),    # w1 (VMEM-resident)
            pl.BlockSpec((1, HIDDEN1), lambda i: (0, 0)),       # b1
            pl.BlockSpec((HIDDEN1, HIDDEN2), lambda i: (0, 0)), # w2
            pl.BlockSpec((1, HIDDEN2), lambda i: (0, 0)),       # b2
            pl.BlockSpec((HIDDEN2, d_out), lambda i: (0, 0)),   # w3 (true width)
            pl.BlockSpec((1, d_out), lambda i: (0, 0)),         # b3
        ],
        out_specs=pl.BlockSpec((tile_b, d_out), lambda i: (i, 0)),
        compiler_params=pltpu.CompilerParams(
            dimension_semantics=("parallel",),  # shard batch tiles across v7x's 2 TCs
        ),
        cost_estimate=pl.CostEstimate(
            flops=flops, transcendentals=0, bytes_accessed=bytes_accessed),
    )(x_p, prep["w1"], prep["b1"], prep["w2"], prep["b2"], prep["w3"], prep["b3"])

    return out if b_pad == B else out[:B]


# Single fused dispatch: pad + pallas_call + slice compile into one executable.
dqn_forward = jax.jit(_dqn_forward)


def dqn_reference(x, params):
    """Reference matching the kernel's numerics (bf16 operands, f32 accumulate)."""
    xb = x.astype(jnp.bfloat16)
    h1 = jnp.dot(xb, params["w1"].astype(jnp.bfloat16),
                 preferred_element_type=jnp.float32) + params["b1"]
    h1 = jnp.maximum(h1, 0.0).astype(jnp.bfloat16)
    h2 = jnp.dot(h1, params["w2"].astype(jnp.bfloat16),
                 preferred_element_type=jnp.float32) + params["b2"]
    h2 = jnp.maximum(h2, 0.0).astype(jnp.bfloat16)
    return jnp.dot(h2, params["w3"].astype(jnp.bfloat16),
                   preferred_element_type=jnp.float32) + params["b3"]


if __name__ == "__main__":
    key = jax.random.PRNGKey(0)
    k_params, k_x1, k_x2 = jax.random.split(key, 3)

    input_dim = 32   # flattened environment observation
    output_dim = 16  # number of discrete actions

    params = init_params(k_params, input_dim, output_dim)
    prep = prepare_params(params)

    # Small "acting" batch: single tile, single dispatch.
    x_small = jax.random.normal(k_x1, (8, input_dim), jnp.float32)
    q_small = jax.block_until_ready(dqn_forward(x_small, prep))
    ref_small = dqn_reference(x_small, params)
    assert q_small.shape == (8, output_dim)
    assert jnp.allclose(q_small, ref_small, atol=2e-2, rtol=2e-2), "mismatch (small batch)"

    # "Training" batch: exercises multi-tile grid + batch padding (200 -> 2x112).
    x_train = jax.random.normal(k_x2, (200, input_dim), jnp.float32)
    q_train = jax.block_until_ready(dqn_forward(x_train, prep))
    ref_train = dqn_reference(x_train, params)
    assert q_train.shape == (200, output_dim)
    assert jnp.allclose(q_train, ref_train, atol=2e-2, rtol=2e-2), "mismatch (train batch)"

    print("KERNEL_OK")
</pallas_src>

<mosaic_0001>
module attributes {stable_mosaic.version = 11 : i64} {
  func.func @dqn_kernel(%arg0: i32, %arg1: memref<8x32xf32, #tpu.memory_space<vmem>>, %arg2: memref<32x128xbf16, #tpu.memory_space<vmem>>, %arg3: memref<1x128xf32, #tpu.memory_space<vmem>>, %arg4: memref<128x256xbf16, #tpu.memory_space<vmem>>, %arg5: memref<1x256xf32, #tpu.memory_space<vmem>>, %arg6: memref<256x16xbf16, #tpu.memory_space<vmem>>, %arg7: memref<1x16xf32, #tpu.memory_space<vmem>>, %arg8: memref<8x16xf32, #tpu.memory_space<vmem>>) attributes {dimension_semantics = [#tpu.dimension_semantics<parallel>], iteration_bounds = array<i64: 1>, scalar_prefetch = 0 : i64, scratch_operands = 0 : i64, tpu.core_type = #tpu.core_type<tc>, window_params = [{transform_indices = @transform_0, window_bounds = array<i64: 8, 32>}, {pipeline_mode = #tpu.pipeline_mode<synchronous>, transform_indices = @transform_1, window_bounds = array<i64: 32, 128>}, {pipeline_mode = #tpu.pipeline_mode<synchronous>, transform_indices = @transform_2, window_bounds = array<i64: 1, 128>}, {pipeline_mode = #tpu.pipeline_mode<synchronous>, transform_indices = @transform_3, window_bounds = array<i64: 128, 256>}, {pipeline_mode = #tpu.pipeline_mode<synchronous>, transform_indices = @transform_4, window_bounds = array<i64: 1, 256>}, {pipeline_mode = #tpu.pipeline_mode<synchronous>, transform_indices = @transform_5, window_bounds = array<i64: 256, 16>}, {pipeline_mode = #tpu.pipeline_mode<synchronous>, transform_indices = @transform_6, window_bounds = array<i64: 1, 16>}, {transform_indices = @transform_7, window_bounds = array<i64: 8, 16>}]} {
    %c0 = arith.constant 0 : index
    %c0_0 = arith.constant 0 : index
    %0 = vector.load %arg1[%c0, %c0_0] : memref<8x32xf32, #tpu.memory_space<vmem>>, vector<8x32xf32>
    %1 = arith.truncf %0 : vector<8x32xf32> to vector<8x32xbf16>
    %c0_1 = arith.constant 0 : index
    %c0_2 = arith.constant 0 : index
    %2 = vector.load %arg2[%c0_1, %c0_2] : memref<32x128xbf16, #tpu.memory_space<vmem>>, vector<32x128xbf16>
    %cst = arith.constant dense<0.000000e+00> : vector<8x128xf32>
    %3 = tpu.matmul %1, %2, %cst {dimension_numbers = #tpu.dot_dimension_numbers<[1], [0], [0], [1], [0, 0, 1, 1], [], []>} : vector<8x32xbf16>, vector<32x128xbf16>, vector<8x128xf32> -> vector<8x128xf32>
    %c0_3 = arith.constant 0 : index
    %c0_4 = arith.constant 0 : index
    %4 = vector.load %arg3[%c0_3, %c0_4] : memref<1x128xf32, #tpu.memory_space<vmem>>, vector<1x128xf32>
    %5 = vector.broadcast %4 : vector<1x128xf32> to vector<8x128xf32>
    %6 = arith.addf %3, %5 : vector<8x128xf32>
    %cst_5 = arith.constant 0.000000e+00 : f32
    %7 = vector.broadcast %cst_5 : f32 to vector<8x128xf32>
    %8 = arith.maximumf %6, %7 : vector<8x128xf32>
    %9 = arith.truncf %8 : vector<8x128xf32> to vector<8x128xbf16>
    %c0_6 = arith.constant 0 : index
    %c0_7 = arith.constant 0 : index
    %10 = vector.load %arg4[%c0_6, %c0_7] : memref<128x256xbf16, #tpu.memory_space<vmem>>, vector<128x256xbf16>
    %cst_8 = arith.constant dense<0.000000e+00> : vector<8x256xf32>
    %11 = tpu.matmul %9, %10, %cst_8 {dimension_numbers = #tpu.dot_dimension_numbers<[1], [0], [0], [1], [0, 0, 1, 1], [], []>} : vector<8x128xbf16>, vector<128x256xbf16>, vector<8x256xf32> -> vector<8x256xf32>
    %c0_9 = arith.constant 0 : index
    %c0_10 = arith.constant 0 : index
    %12 = vector.load %arg5[%c0_9, %c0_10] : memref<1x256xf32, #tpu.memory_space<vmem>>, vector<1x256xf32>
    %13 = vector.broadcast %12 : vector<1x256xf32> to vector<8x256xf32>
    %14 = arith.addf %11, %13 : vector<8x256xf32>
    %cst_11 = arith.constant 0.000000e+00 : f32
    %15 = vector.broadcast %cst_11 : f32 to vector<8x256xf32>
    %16 = arith.maximumf %14, %15 : vector<8x256xf32>
    %17 = arith.truncf %16 : vector<8x256xf32> to vector<8x256xbf16>
    %c0_12 = arith.constant 0 : index
    %c0_13 = arith.constant 0 : index
    %18 = vector.load %arg6[%c0_12, %c0_13] : memref<256x16xbf16, #tpu.memory_space<vmem>>, vector<256x16xbf16>
    %cst_14 = arith.constant dense<0.000000e+00> : vector<8x16xf32>
    %19 = tpu.matmul %17, %18, %cst_14 {dimension_numbers = #tpu.dot_dimension_numbers<[1], [0], [0], [1], [0, 0, 1, 1], [], []>} : vector<8x256xbf16>, vector<256x16xbf16>, vector<8x16xf32> -> vector<8x16xf32>
    %c0_15 = arith.constant 0 : index
    %c0_16 = arith.constant 0 : index
    %20 = vector.load %arg7[%c0_15, %c0_16] : memref<1x16xf32, #tpu.memory_space<vmem>>, vector<1x16xf32>
    %21 = vector.broadcast %20 : vector<1x16xf32> to vector<8x16xf32>
    %22 = arith.addf %19, %21 : vector<8x16xf32>
    %c0_17 = arith.constant 0 : index
    %c0_18 = arith.constant 0 : index
    %23 = vector.load %arg8[%c0_17, %c0_18] : memref<8x16xf32, #tpu.memory_space<vmem>>, vector<8x16xf32>
    tpu.vector_store %arg8[%c0_17, %c0_18], %22 {strides = array<i32>} : memref<8x16xf32, #tpu.memory_space<vmem>>, vector<8x16xf32>,
    return
  }
  func.func @transform_0(%arg0: i32) -> (i32, i32) {
    %c0_i32 = arith.constant 0 : i32
    %c0_i32_0 = arith.constant 0 : i32
    return %arg0, %c0_i32 : i32, i32
  }
  func.func @transform_1(%arg0: i32) -> (i32, i32) {
    %c0_i32 = arith.constant 0 : i32
    %c0_i32_0 = arith.constant 0 : i32
    %c0_i32_1 = arith.constant 0 : i32
    return %c0_i32, %c0_i32_0 : i32, i32
  }
  func.func @transform_2(%arg0: i32) -> (i32, i32) {
    %c0_i32 = arith.constant 0 : i32
    %c0_i32_0 = arith.constant 0 : i32
    %c0_i32_1 = arith.constant 0 : i32
    return %c0_i32, %c0_i32_0 : i32, i32
  }
  func.func @transform_3(%arg0: i32) -> (i32, i32) {
    %c0_i32 = arith.constant 0 : i32
    %c0_i32_0 = arith.constant 0 : i32
    %c0_i32_1 = arith.constant 0 : i32
    return %c0_i32, %c0_i32_0 : i32, i32
  }
  func.func @transform_4(%arg0: i32) -> (i32, i32) {
    %c0_i32 = arith.constant 0 : i32
    %c0_i32_0 = arith.constant 0 : i32
    %c0_i32_1 = arith.constant 0 : i32
    return %c0_i32, %c0_i32_0 : i32, i32
  }
  func.func @transform_5(%arg0: i32) -> (i32, i32) {
    %c0_i32 = arith.constant 0 : i32
    %c0_i32_0 = arith.constant 0 : i32
    %c0_i32_1 = arith.constant 0 : i32
    return %c0_i32, %c0_i32_0 : i32, i32
  }
  func.func @transform_6(%arg0: i32) -> (i32, i32) {
    %c0_i32 = arith.constant 0 : i32
    %c0_i32_0 = arith.constant 0 : i32
    %c0_i32_1 = arith.constant 0 : i32
    return %c0_i32, %c0_i32_0 : i32, i32
  }
  func.func @transform_7(%arg0: i32) -> (i32, i32) {
    %c0_i32 = arith.constant 0 : i32
    %c0_i32_0 = arith.constant 0 : i32
    return %arg0, %c0_i32 : i32, i32
  }
}

</mosaic_0001>

<bundles_post_ra>
// kernel: _dqn_forward.1
= control target key start
LH: loop header
LB: loop body
LE: loop exit
PB: predicated region body
PF: predicated region fallthrough
CT: control target
= control target key end

     0   :  { %12 = vsyncpa [#allocation3], 0  ;;  %s801_s0 = inlined_call_operand.hbm [shape: f32[8,32], index: 0, kind: input, shape index: {}]   ;;  %s802_s1 = inlined_call_operand.vmem [shape: bf16[32,128], index: 1, kind: input, shape index: {}]   ;;  %s803_s2 = inlined_call_operand.vmem [shape: f32[1,128], index: 2, kind: input, shape index: {}]   ;;  %s804_s3 = inlined_call_operand.vmem [shape: bf16[128,256], index: 3, kind: input, shape index: {}]   ;;  %s805_s4 = inlined_call_operand.vmem [shape: f32[1,256], index: 4, kind: input, shape index: {}]   ;;  %s806_s5 = inlined_call_operand.vmem [shape: bf16[256,16], index: 5, kind: input, shape index: {}]   ;;  %s807_s6 = inlined_call_operand.vmem [shape: f32[1,16], index: 6, kind: input, shape index: {}]   ;;  %s808_s7 = inlined_call_operand.hbm [shape: f32[8,16], index: 7, kind: output, shape index: {}]  }
   0x1   :  { %13 = vsyncpa [#allocation4], 0  ;;  %s621_s24 = smov [#allocation2]   ;;  %s573_s28 = scalar_lea.hbm %s801_s0, 128 }
   0x2   :  { %s20_s25 = sshll.u32 %s621_s24, 4  ;;  %p574_p0 = scmp.ne.s32.totalorder %s801_s0, %s573_s28  ;;  %s21_s25 = int_to_ptr.vmem [resolvable:$true] %s20_s25 }
   0x3   :  { %p577_p1 = scmp.lt.u32.totalorder %s573_s28, %s801_s0 }
   0x5   :  { %p579_p2 = pnand %p577_p1, %p574_p0 }
   0x7   :  { %582 = shalt.err (!%p579_p2)
}
   0x8   :  { %s583_s10 = scalar_lea.vmem %s21_s25, 128  ;;  %p588_p4 = scmp.lt.s32.totalorder %s21_s25, %s21_s25 }
   0x9   :  { %p584_p3 = scmp.ne.s32.totalorder %s21_s25, %s583_s10  ;;  %p589_p5 = scmp.lt.s32.totalorder %s583_s10, %s583_s10 }
   0xb   :  { %p590_p6 = por %p589_p5, %p588_p4 }
   0xd   :  { %p591_p7 = pnand %p590_p6, %p584_p3 }
   0xf   :  { %594 = shalt.err (!%p591_p7)
}
  0x10   :  { %23 = dma.hbm_to_vmem [thread:$0]  %s801_s0, 128, %s21_s25, [#allocation3]  }
  0x11   :  { %617 = dma.done.wait [#allocation3], 128  }
  0x12   :  { %618 = vsyncadd [#allocation3], 4294967168  ;;  %v622_v0 = vmov 0.0   ;;  %vm623_vm0 = vmmov 0   ;;  %v531_v1 = vld [vmem:[%s802_s1] sm:$0xff]   ;;  %v532_v2 = vld [vmem:[%s802_s1 + $0x8] sm:$0xff]   ;;  %v129_v46 = vlaneseq }
  0x13   :  { %518 = vmatprep.subr.bf16.mxu0 %v622_v0  ;;  %522 = vmatprep.mubr.msk.bf16.mxu0 %vm623_vm0, %v622_v0  ;;  %v40_v3 = vld [vmem:[#allocation2] sm:$0xff]  ;;  %v536_v6 = vld [vmem:[%s804_s3 + $0x14] ss:$8 sps:$4 sm:$0xff]   ;;  %vm65_vm1 = vcmask 261120   ;;  %v538_v8 = vld [vmem:[%s804_s3 + $0x10] ss:$8 sps:$4 sm:$0xff]  }
  0x14   :  { %519 = vmatpush3.bf16.msra.mxu0 %v531_v1  ;;  %v533_v4 = vld [vmem:[%s804_s3 + $0x4] ss:$8 sps:$4 sm:$0xff]   ;;  %v535_v5 = vld [vmem:[%s804_s3] ss:$8 sps:$4 sm:$0xff]   ;;  %v41_v7 = vpack.c.bf16 %v40_v3, %v40_v3  ;;  %v542_v11 = vld [vmem:[%s804_s3 + $0x34] ss:$8 sps:$4 sm:$0xff]  }
  0x15   :  { %520 = vmatprep.subr.bf16.mxu0 %v622_v0  ;;  %219 = vmatprep.subr.bf16.mxu1 %v533_v4  ;;  %v539_v9 = vld [vmem:[%s804_s3 + $0x24] ss:$8 sps:$4 sm:$0xff]   ;;  %v541_v10 = vld [vmem:[%s804_s3 + $0x20] ss:$8 sps:$4 sm:$0xff]   ;;  %v544_v12 = vld [vmem:[%s804_s3 + $0x30] ss:$8 sps:$4 sm:$0xff]  }
  0x16   :  { %220 = vmatpush1.bf16.msra.mxu1 %v535_v5  ;;  %v545_v13 = vld [vmem:[%s804_s3 + $0x44] ss:$8 sps:$4 sm:$0xff]   ;;  %v547_v14 = vld [vmem:[%s804_s3 + $0x40] ss:$8 sps:$4 sm:$0xff]   ;;  %v548_v15 = vld [vmem:[%s804_s3 + $0x54] ss:$8 sps:$4 sm:$0xff]  }
  0x17   :  { %221 = vmatprep.subr.bf16.mxu1 %v536_v6  ;;  %v550_v16 = vld [vmem:[%s804_s3 + $0x50] ss:$8 sps:$4 sm:$0xff]   ;;  %v551_v17 = vld [vmem:[%s804_s3 + $0x64] ss:$8 sps:$4 sm:$0xff]   ;;  %v553_v18 = vld [vmem:[%s804_s3 + $0x60] ss:$8 sps:$4 sm:$0xff]  }
  0x18   :  { %521 = vmatpush3.bf16.msra.mxu0 %v532_v2  ;;  %v554_v19 = vld [vmem:[%s804_s3 + $0x74] ss:$8 sps:$4 sm:$0xff]   ;;  %v556_v20 = vld [vmem:[%s804_s3 + $0x70] ss:$8 sps:$4 sm:$0xff]   ;;  %v624_v21 = vmov 0   ;;  %v557_v22 = vld [vmem:[%s806_s5 + $0x40] sm:$0xff]  }
  0x19   :  { %251 = vmatprep.mubr.bf16.mxu1 %v624_v21  ;;  %v558_v23 = vld [vmem:[%s806_s5] sm:$0xff]   ;;  %v559_v24 = vld [vmem:[%s806_s5 + $0x48] sm:$0xff]   ;;  %496 = vmatprep.subr.bf16.mxu0 %v557_v22  ;;  %v561_v26 = vld [vmem:[%s806_s5 + $0x50] sm:$0xff]   ;;  %v130_v47 = vshrl.u32 %v129_v46, 7  ;;  %vm439_vm2 = vcmask 130048  }
  0x1a   :  { %222 = vmatpush1.bf16.msra.mxu1 %v538_v8  ;;  %v560_v25 = vld [vmem:[%s806_s5 + $0x8] sm:$0xff]   ;;  %v562_v27 = vld [vmem:[%s806_s5 + $0x10] sm:$0xff]   ;;  %v563_v28 = vld [vmem:[%s806_s5 + $0x58] sm:$0xff]  }
  0x1b   :  { %523 = vmatmul.mubr.msk.bf16.vlgmr.msra.gmra.mrb[0].mxu0 %vm65_vm1, %v41_v7  ;;  %223 = vmatprep.subr.bf16.mxu1 %v539_v9  ;;  %v564_v29 = vld [vmem:[%s806_s5 + $0x18] sm:$0xff]   ;;  %v565_v30 = vld [vmem:[%s806_s5 + $0x60] sm:$0xff]   ;;  %v567_v32 = vld [vmem:[%s806_s5 + $0x68] sm:$0xff]   ;;  %v131_v48 = vsub.s32 0, %v130_v47  ;;  %v135_v50 = vsub.s32 1, %v130_v47 }
  0x1c   :  { %497 = vmatpush3.bf16.msra.mxu0 %v558_v23  ;;  %v566_v31 = vld [vmem:[%s806_s5 + $0x20] sm:$0xff]   ;;  %v568_v33 = vld [vmem:[%s806_s5 + $0x28] sm:$0xff]   ;;  %v569_v42 = vld [vmem:[%s806_s5 + $0x70] sm:$0xff]  }
  0x1d   :  { %498 = vmatprep.subr.bf16.mxu0 %v559_v24  ;;  %v456_v34 = vld [vmem:[%s803_s2] ss:$0 sm:$0xff]  ;;  %v570_v43 = vld [vmem:[%s806_s5 + $0x30] sm:$0xff]   ;;  %v571_v44 = vld [vmem:[%s806_s5 + $0x78] sm:$0xff]  }
  0x1e   :  { %224 = vmatpush1.bf16.msra.mxu1 %v541_v10  ;;  %v572_v45 = vld [vmem:[%s806_s5 + $0x38] sm:$0xff]   ;;  %v127_v49 = vld [vmem:[%s805_s4] sm:$0x3]  ;;  %s625_s4 = smov [#allocation5]  }
  0x1f   :  { %225 = vmatprep.subr.bf16.mxu1 %v542_v11  ;;  %v132_v51 = vrot.slane %v127_v49, %v131_v48  ;;  %v136_v52 = vrot.slane %v127_v49, %v135_v50  ;;  %v476_v0 = vld [vmem:[%s807_s6] ss:$0 sm:$0xff]  ;;  %s447_s8 = sshll.u32 %s625_s4, 4  ;;  %s448_s8 = int_to_ptr.vmem [resolvable:$true] %s447_s8 }
  0x20   :  { %499 = vmatpush3.bf16.msra.mxu0 %v560_v25  ;;  %s595_s9 = scalar_lea.vmem %s448_s8, 128  ;;  %p600_p9 = scmp.lt.s32.totalorder %s448_s8, %s448_s8 }
  0x21   :  { %500 = vmatprep.subr.bf16.mxu0 %v561_v26  ;;  %p596_p8 = scmp.ne.s32.totalorder %s448_s8, %s595_s9  ;;  %p601_p10 = scmp.lt.s32.totalorder %s595_s9, %s595_s9 }
  0x22   :  { %226 = vmatpush1.bf16.msra.mxu1 %v544_v12 }
  0x23   :  { %227 = vmatprep.subr.bf16.mxu1 %v545_v13  ;;  %p602_p11 = por %p601_p10, %p600_p9 }
  0x24   :  { %501 = vmatpush3.bf16.msra.mxu0 %v562_v27 }
  0x25   :  { %502 = vmatprep.subr.bf16.mxu0 %v563_v28  ;;  %p603_p12 = pnand %p602_p11, %p596_p8 }
  0x26   :  { %228 = vmatpush1.bf16.msra.mxu1 %v547_v14 }
  0x27   :  { %229 = vmatprep.subr.bf16.mxu1 %v548_v15 }
  0x28   :  { %503 = vmatpush3.bf16.msra.mxu0 %v564_v29 }
  0x29   :  { %504 = vmatprep.subr.bf16.mxu0 %v565_v30 }
  0x2a   :  { %230 = vmatpush1.bf16.msra.mxu1 %v550_v16 }
  0x2b   :  { %231 = vmatprep.subr.bf16.mxu1 %v551_v17 }
  0x2c   :  { %505 = vmatpush3.bf16.msra.mxu0 %v566_v31 }
  0x2d   :  { %506 = vmatprep.subr.bf16.mxu0 %v567_v32 }
  0x2e   :  { %232 = vmatpush1.bf16.msra.mxu1 %v553_v18 }
  0x2f   :  { %233 = vmatprep.subr.bf16.mxu1 %v554_v19 }
  0x30   :  { %507 = vmatpush3.bf16.msra.mxu0 %v568_v33 }
  0x31   :  { %508 = vmatprep.subr.bf16.mxu0 %v569_v42 }
  0x32   :  { %234 = vmatpush1.bf16.msra.mxu1 %v556_v20 }
  0x34   :  { %509 = vmatpush3.bf16.msra.mxu0 %v570_v43 }
  0x35   :  { %510 = vmatprep.subr.bf16.mxu0 %v571_v44 }
  0x38   :  { %511 = vmatpush3.bf16.msra.mxu0 %v572_v45 }
  0xee   :  { %v103_v35 = vpop.f32.mrb[0].mxu0 }
  0xef   :  { %v104_v36 = vadd.f32 %v456_v34, %v103_v35  ;;  %v524_v37 = vpop.f32.mrb[1].mxu0 }
  0xf0   :  { %v106_v38 = vpop.f32.mrb[2].mxu0 }
  0xf1   :  { %v109_v39 = vmax.f32 %v104_v36, 0.0  ;;  %v525_v40 = vpop.f32.mrb[3].mxu0 }
  0xf3   :  { %v110_v41 = vpack.c.bf16 %v109_v39, %v109_v39 }
  0xf5   :  { %252 = vmatmul.mubr.bf16.vlgmr.msra.gmra.mrb[0].mxu1 %v110_v41 }
 0x1c8   :  { %v253_v53 = vpop.f32.mrb[0].mxu1 }
 0x1c9   :  { %v254_v54 = vadd.f32 %v253_v53, %v132_v51  ;;  %v255_v55 = vpop.f32.mrb[1].mxu1 }
 0x1ca   :  { %v256_v56 = vadd.f32 %v255_v55, %v136_v52  ;;  %v257_v57 = vpop.f32.mrb[2].mxu1 }
 0x1cb   :  { %v260_v58 = vmax.f32 %v254_v54, 0.0  ;;  %v258_v59 = vpop.f32.mrb[3].mxu1 }
 0x1cc   :  { %v261_v60 = vmax.f32 %v256_v56, 0.0 }
 0x1cd   :  { %v262_v62 = vpack.c.bf16 %v260_v58, %v260_v58 }
 0x1ce   :  { %v263_v61 = vpack.c.bf16 %v261_v60, %v261_v60 }
 0x1d0   :  { %431 = vmatprep.mubr.bf16.mxu0 %v263_v61 }
 0x1d1   :  { %432 = vmatmul.mubr.bf16.vlgmr.msra.gmra.mrb[4].mxu0 %v262_v62 }
 0x2a4   :  { %v512_v63 = vpop.f32.mrb[4].mxu0 }
 0x2a5   :  { %v513_v1 = vpop.f32.mrb[5].mxu0 }
 0x2a6   :  { %v514_v2 = vadd.f32 %v513_v1, %v512_v63  ;;  %v515_v3 = vpop.f32.mrb[6].mxu0 }
 0x2a7   :  { %v516_v4 = vpop.f32.mrb[7].mxu0 }
 0x2a8   :  { %v434_v5 = vadd.f32 %v514_v2, %v476_v0 }
 0x2aa   :  { %440 = vst.msk [vmem:[#allocation5] sm:$0xff] %vm439_vm2, %v434_v5 }
 0x2ab   :  { %606 = shalt.err (!%p603_p12)
}
 0x2ac   :  { %s607_s6 = scalar_lea.hbm %s808_s7, 128 }
 0x2ad   :  { %p608_p13 = scmp.ne.s32.totalorder %s808_s7, %s607_s6  ;;  %p611_p0 = scmp.lt.u32.totalorder %s607_s6, %s808_s7 }
 0x2af   :  { %p613_p1 = pnand %p611_p0, %p608_p13 }
 0x2b1   :  { %616 = shalt.err (!%p613_p1)
}
 0x2b2   :  { %450 = dma.vmem_to_hbm [thread:$0]  %s448_s8, 128, %s808_s7, [#allocation4]  }
 0x2b3   :  { %619 = dma.done.wait [#allocation4], 128  }
 0x2b4   :  { %620 = vsyncadd [#allocation4], 4294967168 }
 0x2b5   :  { %454 = vsyncpa [#allocation3], 1 }
 0x2b6   :  { %455 = vsyncpa [#allocation4], 1 }

</bundles_post_ra>
